<compile_context>
chip_gen: v5e
topology: v5e:2x2
jax: 0.10.0
libtpu: 0.0.40
codegen_flags: <defaults>
</compile_context>

<pallas_src>
import jax
import jax.numpy as jnp
from jax.experimental import pallas as pl
from jax.experimental.pallas import tpu as pltpu


# ---------------------------------------------------------------- helpers ----
def _round_down(v, m):
    return (v // m) * m


def _vmem_limit_bytes(block_bytes):
    # 2x for the double-buffered HBM<->VMEM windows, plus headroom for internal scratch.
    needed = 2 * sum(block_bytes)
    limit = needed + max(needed // 2, 2 << 20)
    return int(min(max(limit, 4 << 20), 24 << 20))


# ---------------------------------------------------------------- kernels ----
def _tpe_kernel(x_ref, pos_ref, out_ref):
    # x:[tb, ts, D]   pos:[ts, D]  -> broadcast add over the batch tile
    out_ref[...] = (x_ref[...] + pos_ref[...][None, :, :]).astype(out_ref.dtype)


def _tpe_flat_kernel(x_ref, pos_ref, out_ref):
    # x:[tb, tf]      pos:[1, tf]  (seq and d_model flattened -> lane-dense stores)
    out_ref[...] = (x_ref[...] + pos_ref[...]).astype(out_ref.dtype)


def _tpe_momentum_kernel(scale_ref, x_ref, pos_ref, mom_ref, out_ref):
    # scale: SMEM f32[1]; mom:[tb, ts, 1] in its original dtype; f32 math in-kernel.
    scale = scale_ref[0]
    mom = mom_ref[...].astype(jnp.float32) * scale
    pos = pos_ref[...].astype(jnp.float32)[None, :, :] * mom
    out_ref[...] = (x_ref[...].astype(jnp.float32) + pos).astype(out_ref.dtype)


# ---------------------------------------------------------------- wrapper ----
def temporal_position_encoding(x, position_embeddings, momentum_scale,
                               momentum_signal=None, *,
                               target_block_bytes=2 << 20, donate_x=False):
    """x: [B, S, D]; position_embeddings: [max_len, D] (max_len >= S);
    momentum_scale: [1]; momentum_signal: optional [B, S]."""
    B, S, D = x.shape
    max_len = position_embeddings.shape[0]
    itemsize = x.dtype.itemsize
    out_shape3 = jax.ShapeDtypeStruct((B, S, D), x.dtype)

    # ------------ no-momentum, non-128-multiple d_model: lane-dense 2-D path ------
    if momentum_signal is None and D % 128 != 0:
        F = S * D
        if F % 128 == 0 or F * itemsize <= target_block_bytes:
            if F % 128 == 0:
                tile_f = min(F, max(128, _round_down(target_block_bytes // itemsize, 128)))
            else:
                tile_f = F                              # full flat dim (fits the budget)
            if B <= 8 or B * tile_f * itemsize <= target_block_bytes:
                tile_b = B                              # 2nd-to-last dim: mult of 8 or full
            else:
                t = max(8, _round_down(target_block_bytes // (tile_f * itemsize), 8))
                tile_b = B if t >= B else t
            # keep >= 2 grid steps so both v7x TensorCores get work
            if pl.cdiv(F, tile_f) == 1 and pl.cdiv(B, tile_b) == 1:
                if F % 128 == 0 and F >= 256:
                    tile_f = max(128, _round_down(F // 2, 128))
                elif B >= 16:
                    tile_b = max(8, _round_down(B // 2, 8))

            if tile_f % 128 == 0 or S == max_len:       # BlockSpec can address full table
                pos2 = position_embeddings.reshape(1, max_len * D)
            else:
                pos2 = position_embeddings[:S].reshape(1, F)
            x2 = x.reshape(B, F)

            grid = (pl.cdiv(F, tile_f), pl.cdiv(B, tile_b))
            blk = (tile_b * tile_f * itemsize,
                   tile_b * tile_f * itemsize,
                   tile_f * pos2.dtype.itemsize)
            out2 = pl.pallas_call(
                _tpe_flat_kernel,
                grid=grid,
                in_specs=[pl.BlockSpec((tile_b, tile_f), lambda f, b: (b, f)),
                          pl.BlockSpec((1, tile_f), lambda f, b: (0, f))],
                out_specs=pl.BlockSpec((tile_b, tile_f), lambda f, b: (b, f)),
                out_shape=jax.ShapeDtypeStruct((B, F), x.dtype),
                compiler_params=pltpu.CompilerParams(
                    dimension_semantics=("parallel", "parallel"),
                    vmem_limit_bytes=_vmem_limit_bytes(blk)),
                input_output_aliases={0: 0} if donate_x else {},
            )(x2, pos2)
            return out2.reshape(B, S, D)

    # ------------------------- 3-D tiling (plain fallback & momentum path) --------
    row_bytes = D * itemsize
    if S * row_bytes <= target_block_bytes:
        tile_s = S
        tile_b = max(1, min(B, target_block_bytes // (S * row_bytes)))
    else:
        tile_b = 1
        tile_s = min(S, max(8, _round_down(target_block_bytes // row_bytes, 8)))
    # keep >= 2 grid steps so both v7x TensorCores get work
    if pl.cdiv(S, tile_s) == 1 and pl.cdiv(B, tile_b) == 1:
        if B > 1:
            tile_b = (B + 1) // 2
        elif S >= 16:
            tile_s = max(8, _round_down(S // 2, 8))

    # the pos BlockSpec can address the unsliced table iff tile_s is 8-aligned
    if tile_s % 8 == 0 or S == max_len:
        pos_arr = position_embeddings
    else:
        pos_arr = position_embeddings[:S]

    grid = (pl.cdiv(S, tile_s), pl.cdiv(B, tile_b))      # batch inner -> pos stays resident
    x_spec = pl.BlockSpec((tile_b, tile_s, D), lambda s, b: (b, s, 0))
    pos_spec = pl.BlockSpec((tile_s, D), lambda s, b: (s, 0))
    out_spec = pl.BlockSpec((tile_b, tile_s, D), lambda s, b: (b, s, 0))
    x_blk = tile_b * tile_s * D * itemsize
    pos_blk = tile_s * D * position_embeddings.dtype.itemsize

    if momentum_signal is None:
        return pl.pallas_call(
            _tpe_kernel,
            grid=grid,
            in_specs=[x_spec, pos_spec],
            out_specs=out_spec,
            out_shape=out_shape3,
            compiler_params=pltpu.CompilerParams(
                dimension_semantics=("parallel", "parallel"),
                vmem_limit_bytes=_vmem_limit_bytes((x_blk, x_blk, pos_blk))),
            input_output_aliases={0: 0} if donate_x else {},
        )(x, pos_arr)

    # ------------------------------------------------------------ momentum path ---
    mom = momentum_signal.reshape(B, S, 1)               # view only: no astype here
    scale = jnp.asarray(momentum_scale, jnp.float32).reshape(1)
    mom_spec = pl.BlockSpec((tile_b, tile_s, 1), lambda s, b: (b, s, 0))
    scale_spec = pl.BlockSpec(memory_space=pltpu.MemorySpace.SMEM)
    mom_blk = tile_b * tile_s * mom.dtype.itemsize
    return pl.pallas_call(
        _tpe_momentum_kernel,
        grid=grid,
        in_specs=[scale_spec, x_spec, pos_spec, mom_spec],
        out_specs=out_spec,
        out_shape=out_shape3,
        compiler_params=pltpu.CompilerParams(
            dimension_semantics=("parallel", "parallel"),
            vmem_limit_bytes=_vmem_limit_bytes((x_blk, x_blk, pos_blk, mom_blk))),
        input_output_aliases={1: 0} if donate_x else {},
    )(scale, x, pos_arr, mom)


# -------------------------------------------------------------- reference ----
def reference(x, position_embeddings, momentum_scale, momentum_signal=None):
    S = x.shape[1]
    pos = position_embeddings[:S][None, :, :]
    if momentum_signal is not None:
        pos = pos * (momentum_signal[..., None] * momentum_scale)
    return x + pos


# ------------------------------------------------------------------- main ----
if __name__ == "__main__":
    key = jax.random.PRNGKey(0)
    k_x, k_pos, k_mom, k_x2, k_pos2, k_x3, k_mom3 = jax.random.split(key, 7)

    # case 1: d_model=32 (not 128-multiple): plain -> flat lane-dense path,
    #         momentum -> 3-D path.
    B, S, D, L = 2, 8, 32, 16
    x = jax.random.normal(k_x, (B, S, D), jnp.float32)
    pos_tbl = jax.random.normal(k_pos, (L, D), jnp.float32) * 0.1
    m_scale = jnp.full((1,), 1.37, jnp.float32)
    m_sig = jax.random.normal(k_mom, (B, S), jnp.float32)
    out_plain = temporal_position_encoding(x, pos_tbl, m_scale)
    out_mom = temporal_position_encoding(x, pos_tbl, m_scale, m_sig)

    # case 2: d_model=128 (lane-aligned): plain -> 3-D path.
    B2, S2, D2, L2 = 2, 8, 128, 16
    x2 = jax.random.normal(k_x2, (B2, S2, D2), jnp.float32)
    pos_tbl2 = jax.random.normal(k_pos2, (L2, D2), jnp.float32) * 0.1
    out_plain2 = temporal_position_encoding(x2, pos_tbl2, m_scale)

    # case 3: seq not a multiple of 8: exercises the pos-table slice fallback.
    B3, S3 = 2, 5
    x3 = jax.random.normal(k_x3, (B3, S3, D2), jnp.float32)
    m_sig3 = jax.random.normal(k_mom3, (B3, S3), jnp.float32)
    out_mom3 = temporal_position_encoding(x3, pos_tbl2, m_scale, m_sig3)

    out_plain, out_mom, out_plain2, out_mom3 = jax.block_until_ready(
        (out_plain, out_mom, out_plain2, out_mom3))

    assert out_plain.shape == (B, S, D) and out_mom.shape == (B, S, D)
    assert jnp.allclose(out_plain, reference(x, pos_tbl, m_scale),
                        atol=1e-6, rtol=1e-6), "no-momentum (flat) mismatch"
    assert jnp.allclose(out_mom, reference(x, pos_tbl, m_scale, m_sig),
                        atol=1e-6, rtol=1e-6), "momentum mismatch"
    assert jnp.allclose(out_plain2, reference(x2, pos_tbl2, m_scale),
                        atol=1e-6, rtol=1e-6), "no-momentum (3-D) mismatch"
    assert jnp.allclose(out_mom3, reference(x3, pos_tbl2, m_scale, m_sig3),
                        atol=1e-6, rtol=1e-6), "momentum (S%8!=0) mismatch"
    print("KERNEL_OK")
</pallas_src>

<mosaic_0001>
module attributes {stable_mosaic.version = 11 : i64} {
  func.func @_tpe_flat_kernel(%arg0: i32, %arg1: i32, %arg2: memref<2x128xf32, #tpu.memory_space<vmem>>, %arg3: memref<1x128xf32, #tpu.memory_space<vmem>>, %arg4: memref<2x128xf32, #tpu.memory_space<vmem>>) attributes {dimension_semantics = [#tpu.dimension_semantics<parallel>, #tpu.dimension_semantics<parallel>], iteration_bounds = array<i64: 2, 1>, scalar_prefetch = 0 : i64, scratch_operands = 0 : i64, tpu.core_type = #tpu.core_type<tc>, window_params = [{transform_indices = @transform_0, window_bounds = array<i64: 2, 128>}, {transform_indices = @transform_1, window_bounds = array<i64: 1, 128>}, {transform_indices = @transform_2, window_bounds = array<i64: 2, 128>}]} {
    %c0 = arith.constant 0 : index
    %c0_0 = arith.constant 0 : index
    %0 = vector.load %arg2[%c0, %c0_0] : memref<2x128xf32, #tpu.memory_space<vmem>>, vector<2x128xf32>
    %c0_1 = arith.constant 0 : index
    %c0_2 = arith.constant 0 : index
    %1 = vector.load %arg3[%c0_1, %c0_2] : memref<1x128xf32, #tpu.memory_space<vmem>>, vector<1x128xf32>
    %2 = vector.broadcast %1 : vector<1x128xf32> to vector<2x128xf32>
    %3 = arith.addf %0, %2 : vector<2x128xf32>
    %c0_3 = arith.constant 0 : index
    %c0_4 = arith.constant 0 : index
    %4 = vector.load %arg4[%c0_3, %c0_4] : memref<2x128xf32, #tpu.memory_space<vmem>>, vector<2x128xf32>
    tpu.vector_store %arg4[%c0_3, %c0_4], %3 {strides = array<i32>} : memref<2x128xf32, #tpu.memory_space<vmem>>, vector<2x128xf32>,
    return
  }
  func.func @transform_0(%arg0: i32, %arg1: i32) -> (i32, i32) {
    %c0_i32 = arith.constant 0 : i32
    return %arg1, %arg0 : i32, i32
  }
  func.func @transform_1(%arg0: i32, %arg1: i32) -> (i32, i32) {
    %c0_i32 = arith.constant 0 : i32
    %c0_i32_0 = arith.constant 0 : i32
    return %c0_i32, %arg0 : i32, i32
  }
  func.func @transform_2(%arg0: i32, %arg1: i32) -> (i32, i32) {
    %c0_i32 = arith.constant 0 : i32
    return %arg1, %arg0 : i32, i32
  }
}

</mosaic_0001>

<bundles_post_ra>
// kernel: tpu_custom_call.1
= control target key start
LH: loop header
LB: loop body
LE: loop exit
PB: predicated region body
PF: predicated region fallthrough
CT: control target
= control target key end

     0   :  { %7 = vsyncpa [#allocation3], 0  ;;  %s714_s0 = inlined_call_operand.hbm [shape: f32[2,256], index: 0, kind: input, shape index: {}]   ;;  %s715_s1 = inlined_call_operand.hbm [shape: f32[1,512], index: 1, kind: input, shape index: {}]   ;;  %s716_s2 = inlined_call_operand.hbm [shape: f32[2,256], index: 2, kind: output, shape index: {}]  }
   0x1   :  { %9 = vsyncpa [#allocation3 + $0x1], 0 }
   0x2   :  { %10 = vsyncpa [#allocation6], 0 }
   0x3   :  { %12 = vsyncpa [#allocation6 + $0x1], 0 }
   0x4   :  { %13 = vsyncpa [#allocation4], 0 }
   0x5   :  { %15 = vsyncpa [#allocation4 + $0x1], 0  ;;  %s584_s9 = smov 0   ;;  %s586_s10 = smov 0  }
   0x6   :  { %s588_s11 = smov 0   ;;  %s590_s12 = smov 0  }
   0x7   :  { %s592_s13 = smov 0   ;;  %s594_s14 = smov 0  }
   0x8 LB: > { %s340_s15 = sadd.s32 4294967295, %s567_s14   ;;  %s341_s16 = sadd.s32 4294967294, %s567_s14   ;;  %s567_s14 = sphi %s594_s14, %s21_s14   ;;  %s563_s13 = sphi %s592_s13, %s725_s13   ;;  %s559_s12 = sphi %s590_s12, %s724_s12   ;;  %s555_s11 = sphi %s588_s11, %s723_s11   ;;  %s551_s10 = sphi %s586_s10, %s722_s10   ;;  %s547_s9 = sphi %s584_s9, %s721_s9  }
   0x9   : > { %s33_s17 = sadd.s32 1, %s563_s13  ;;  %s42_s18 = sadd.s32 1, %s555_s11 }
   0xa   : > { %p35_p0 = scmp.ge.s32.totalorder %s33_s17, 2  ;;  %p49_p1 = scmp.ne.s32.totalorder %s555_s11, %s551_s10 }
   0xb   : > { %p50_p2 = scmp.eq.s32.totalorder %s567_s14, 0  ;;  %p55_p3 = scmp.ne.s32.totalorder %s551_s10, %s547_s9 }
   0xc   : > { %s727_s17 = smov (%p35_p0, %s33_s17), 0  ;;  %p56_p5 = scmp.eq.s32.totalorder %s340_s15, 0 }
   0xd   : > { %p625_p4 = por %p50_p2, %p49_p1  ;;  %s38_s20 = ssub.s32 %s563_s13, %s727_s17 }
   0xe   : > { %p107_p6 = scmp.eq.s32.totalorder %s340_s15, 1  ;;  %p40_p7 = scmp.eq.s32.totalorder %s38_s20, 0 }
   0xf   : > { %p631_p8 = por %p56_p5, %p55_p3  ;;  %p113_p10 = scmp.eq.s32.totalorder %s341_s16, 1 }
  0x10   : > { %p635_p9 = por %p107_p6, %p49_p1  ;;  %p343_p12 = scmp.ge.s32.totalorder %s567_s14, 2 }
  0x11   : > { %s640_s23 = scalar_select %p40_p7, %s555_s11, %s42_s18  }
  0x12   : > { %p642_p11 = por %p113_p10, %p55_p3  ;;  %p370_p13 = scmp.lt.s32.totalorder %s567_s14, 2 }
  0x13   : > { %s133_s25 = sand.u32 1, %s555_s11   ;;  %s345_s27 = sshll.u32 %s563_s13, 1 }
  0x14   : > { %s344_s26 = sshll.u32 %s133_s25, 1  ;;  %s143_s30 = scalar_lea.hbm %s714_s0, %s345_s27 }
  0x15   : > { %s137_s3 = scalar_lea.vmem [#allocation2], %s344_s26  ;;  %s145_s5 = sshll.u32 %s143_s30, 4  ;;  %s146_s5 = int_to_ptr.hbm [resolvable:$true] %s145_s5 }
  0x16   : > { %s147_s4 = sshll.u32 %s137_s3, 4  ;;  %p360_p0 = pnand %p370_p13, %p625_p4  ;;  %s148_s4 = int_to_ptr.vmem [resolvable:$true] %s147_s4 }
  0x17   : > { %p346_p1 = scmp.ge.s32.totalorder %s567_s14, 1  ;;  %p169_p2 = scmp.lt.s32.totalorder %s567_s14, 3 }
  0x18   : > { %s134_s6 = scalar_lea.sflag [#allocation3], %s133_s25  ;;  %s160_s15 = scalar_lea.hbm %s715_s1, %s563_s13 }
  0x19   : > { %362 = dma.hbm_to_vmem [thread:$0]  (!%p360_p0), %s146_s5, 32, %s148_s4, %s134_s6  }
  0x1a   : > { %p170_p3 = pnand %p346_p1, %p169_p2  ;;  %s157_s16 = scalar_lea.vmem [#allocation5], %s133_s25 }
  0x1b   : > { %s164_s18 = sshll.u32 %s157_s16, 4  ;;  %s162_s20 = sshll.u32 %s160_s15, 4  ;;  %s165_s18 = int_to_ptr.vmem [resolvable:$true] %s164_s18  ;;  %s163_s20 = int_to_ptr.hbm [resolvable:$true] %s162_s20 }
  0x1c   : > { %s155_s26 = scalar_lea.sflag [#allocation6], %s133_s25  ;;  %173 = sbr.rel (%p170_p3) target bundleno = 51 (0x33), region = 28 }
  0x1d   : > { %365 = dma.hbm_to_vmem [thread:$0]  (!%p360_p0), %s163_s20, 16, %s165_s18, %s155_s26  }
  0x1e   : > { %s662_s19 = sand.u32 (!%p170_p3), 1, %s551_s10  }
  0x1f   : > { %s347_s27 = sshll.u32 (!%p170_p3), %s662_s19, 1  ;;  %s176_s28 = scalar_lea.sflag (!%p170_p3), [#allocation3], %s662_s19 }
  0x20   : > { %s179_s29 = scalar_lea.vmem (!%p170_p3), [#allocation2], %s347_s27 }
  0x21   : > { %534 = dma.done.wait (%p631_p8), %s176_s28, 32  }
  0x22   : > { %536 = vsyncadd (%p631_p8), %s176_s28, 4294967264  ;;  %s186_s25 = scalar_lea.sflag [#allocation6], %s662_s19  ;;  %s188_s30 = scalar_lea.vmem [#allocation5], %s662_s19 }
  0x23   : > { %538 = dma.done.wait (%p631_p8), %s186_s25, 16  }
  0x24   : > { %540 = vsyncadd (%p631_p8), %s186_s25, 4294967280  ;;  %s350_s3 = sshll.u32 %s559_s12, 1  ;;  %s213_s7 = scalar_lea.vmem [#allocation7], %s347_s27  ;;  %v214_v0 = vld [vmem:[%s179_s29] sm:$0x3] }
  0x25   : > { %s234_s6 = scalar_lea.hbm %s716_s2, %s350_s3  ;;  %s236_s8 = sshll.u32 %s213_s7, 4  ;;  %v420_v1 = vld [vmem:[%s188_s30] ss:$0 sm:$0xff]  ;;  %s237_s8 = int_to_ptr.vmem [resolvable:$true] %s236_s8 }
  0x26   : > { %s238_s15 = sshll.u32 %s234_s6, 4  ;;  %v219_v2 = vadd.f32 %v420_v1, %v214_v0  ;;  %s222_s16 = scalar_lea.sflag [#allocation4], %s662_s19  ;;  %s239_s15 = int_to_ptr.hbm [resolvable:$true] %s238_s15 }
  0x27   : > { %s495_s21 = sshra.s32 %s239_s15, 4  ;;  %s501_s26 = scalar_lea.hbm %s716_s2, 4  ;;  %s496_s21 = int_to_ptr.hbm [resolvable:$true] %s495_s21 }
  0x28   : > { %220 = vst [vmem:[%s213_s7] sm:$0x3] %v219_v2  ;;  %s497_s18 = scalar_lea.hbm %s496_s21, 2  ;;  %p502_p7 = scmp.lt.s32.totalorder %s496_s21, %s716_s2 }
  0x29   : > { %p498_p4 = scmp.ne.s32.totalorder %s496_s21, %s497_s18  ;;  %p503_p8 = scmp.lt.s32.totalorder %s501_s26, %s497_s18 }
  0x2b   : > { %p499_p5 = pnand %p498_p4, %p635_p9  ;;  %p504_p10 = por %p503_p8, %p502_p7 }
  0x2d   : > { %p500_p6 = pneg %p499_p5 }
  0x2f   : > { %p505_p13 = pnand %p504_p10, %p500_p6 }
  0x31   : > { %508 = shalt.err (!%p505_p13)
}
  0x32   : > { %357 = dma.vmem_to_hbm [thread:$0]  (%p635_p9), %s237_s8, 32, %s239_s15, %s222_s16  }
  0x33 PF: > { %s250_s19 = sand.u32 1, %s547_s9   ;;  %p367_p0 = pnand %p343_p12, %p642_p11 }
  0x34   : > { %s251_s29 = scalar_lea.sflag [#allocation4], %s250_s19 }
  0x35   : > { %p368_p1 = pneg %p367_p0 }
  0x37   : > { %542 = dma.done.wait (%p368_p1), %s251_s29, 32  }
  0x38   : > { %544 = vsyncadd (%p368_p1), %s251_s29, 4294967264  ;;  %s21_s14 = sadd.s32 1, %s567_s14   ;;  %s721_s9 = smov %s551_s10 }
  0x39   : > { %p18_p2 = scmp.ge.s32.totalorder %s21_s14, 4   ;;  %s722_s10 = smov %s555_s11 }
  0x3a   : > { %s723_s11 = smov %s640_s23  ;;  %s724_s12 = smov %s563_s13 }
  0x3b   : > { %s725_s13 = smov %s727_s17  ;;  %20 = sbr.rel (!%p18_p2) target bundleno = 8 (0x8), region = 86 }
  0x40   :  { %257 = vsyncpa [#allocation3], 1 }
  0x41   :  { %259 = vsyncpa [#allocation3 + $0x1], 1 }
  0x42   :  { %260 = vsyncpa [#allocation6], 1 }
  0x43   :  { %262 = vsyncpa [#allocation6 + $0x1], 1 }
  0x44   :  { %263 = vsyncpa [#allocation4], 1 }
  0x45   :  { %265 = vsyncpa [#allocation4 + $0x1], 1 }

</bundles_post_ra>
